<compile_context>
chip_gen: v6e
topology: v6e:2x2x1
jax: 0.10.0
libtpu: 0.0.40
codegen_flags: <defaults>
</compile_context>

<pallas_src>
import functools

import jax
import jax.numpy as jnp
from jax import lax
from jax.experimental import pallas as pl
from jax.experimental.pallas import tpu as pltpu

TEMPERATURE = 0.7
_EPS = 1e-8  # F.cosine_similarity eps clamp


def _round_up(x, m):
    return ((x + m - 1) // m) * m


def _vmem_limit_bytes():
    """Generation-aware scoped-VMEM limit (~80% of physical, capped at 100 MiB)."""
    try:
        cap = pltpu.get_tpu_info().vmem_capacity_bytes
    except Exception:
        cap = 64 << 20  # conservative fallback: safe on every generation
    return int(min(100 << 20, cap * 0.8))


def _pick_tiles(n, d_pad, feat_itemsize):
    """Row tile TM and prototype-column tile TN (N is padded to a multiple of both)."""
    if n <= 256:
        t = _round_up(n, 8)          # single tile along both axes
        return t, t
    tn = 256                         # MXU-width aligned, lane-dense sim columns
    tm = 512 if n >= 512 else 256
    # VMEM-aware cap: double-buffered feature (caller dtype) + diag-prototype row
    # blocks must leave headroom for streamed u^T blocks, sim and the accumulator.
    while tm > 256 and 2 * tm * d_pad * (feat_itemsize + 2) > (24 << 20):
        tm //= 2
    return tm, tn


def _proto_kernel(labr_ref, labk_ref, feat_ref, un_ref, acc_ref, *, mxu_dtype):
    """Accumulate unnormalized class prototypes for one row tile; normalize at k==last."""
    k = pl.program_id(1)

    @pl.when(k == 0)
    def _():
        acc_ref[...] = jnp.zeros_like(acc_ref)

    # (TP, TK) same-class mask built in-kernel from labels; 0/1 is exact in bf16.
    mask = (labr_ref[...] == labk_ref[...]).astype(mxu_dtype)
    acc_ref[...] += jnp.dot(mask, feat_ref[...].astype(mxu_dtype),
                            preferred_element_type=jnp.float32)

    @pl.when(k == pl.num_programs(1) - 1)
    def _():
        u = acc_ref[...]                                        # (TP, D) f32
        u_sq = jnp.sum(u * u, axis=1, keepdims=True)
        u_scale = lax.rsqrt(jnp.maximum(u_sq, _EPS * _EPS))     # EUP rsqrt, eps clamp
        un_ref[...] = (u * u_scale).astype(un_ref.dtype)


def _loss_kernel(feat_ref, unt_ref, und_ref, loss_ref, rsum_ref, *,
                 inv_t, n_valid, n_pad, tn, mxu_dtype):
    """Row/column-tiled loss with a running row_sum accumulator."""
    j = pl.program_id(1)

    @pl.when(j == 0)
    def _():
        rsum_ref[...] = jnp.zeros_like(rsum_ref)

    feat = feat_ref[...].astype(jnp.float32)                    # (TM, D)
    f_sq = jnp.sum(feat * feat, axis=1, keepdims=True)
    # Fold 1/T into the normalization scale: the sim matmul directly yields cos/T.
    f_scale = lax.rsqrt(jnp.maximum(f_sq, _EPS * _EPS)) * inv_t
    feat_n = feat * f_scale                                     # (TM, D) f32

    # (TM, TN) block of cos/T against the streamed, pre-transposed prototype columns.
    sim_scaled = jnp.dot(feat_n.astype(mxu_dtype), unt_ref[...],
                         preferred_element_type=jnp.float32)
    e = jnp.exp(sim_scaled)                                     # bounded: |cos| <= 1
    if n_valid < n_pad:                                         # static: only if padded
        col = j * tn + lax.broadcasted_iota(jnp.int32, (1, tn), 1)
        e = e * (col < n_valid).astype(jnp.float32)             # drop padded prototypes
    rsum_ref[...] += jnp.sum(e, axis=1, keepdims=True)

    @pl.when(j == pl.num_programs(1) - 1)
    def _():
        # Diagonal term via an element-wise dot with this tile's own prototype rows:
        # log(e_ii) == cos_ii / T == <feat_n_i, u_n_i>   (1/T already folded in).
        und = und_ref[...].astype(jnp.float32)                  # (TM, D)
        diag_scaled = jnp.sum(feat_n * und, axis=1, keepdims=True)
        # loss_i = -log(e_ii / row_sum_i) = log(row_sum_i) - cos_ii / T
        loss_ref[...] = jnp.log(rsum_ref[...]) - diag_scaled


def protocon_loss(fusion_feature, labels, *, temperature=TEMPERATURE,
                  mxu_dtype=jnp.bfloat16):
    """fusion_feature: [N, D] float, labels: [N] int -> scalar loss (float32)."""
    feat = fusion_feature                    # keep caller dtype for the HBM streams
    n, d = feat.shape
    d_pad = _round_up(d, 128)                # lane-dense / full MXU K (zero pad is inert)
    tm, tn = _pick_tiles(n, d_pad, feat.dtype.itemsize)
    n_pad = _round_up(n, max(tm, tn))        # tm is a multiple of tn (or equal)

    if (n_pad, d_pad) != (n, d):
        feat = jnp.pad(feat, ((0, n_pad - n), (0, d_pad - d)))
    labels = labels.astype(jnp.int32)
    if n_pad != n:
        labels = jnp.pad(labels, (0, n_pad - n), constant_values=-1)
    labels_c = labels.reshape(n_pad, 1)      # row layout for the broadcast compare
    labels_r = labels.reshape(1, n_pad)      # column layout for the broadcast compare

    vmem_limit = _vmem_limit_bytes()

    # ---- Kernel 1: class prototypes, tiled (output rows x K over samples). ----
    tp = tn
    u_n = pl.pallas_call(
        functools.partial(_proto_kernel, mxu_dtype=mxu_dtype),
        out_shape=jax.ShapeDtypeStruct((n_pad, d_pad), mxu_dtype),
        grid=(n_pad // tp, n_pad // tp),
        in_specs=[
            pl.BlockSpec((tp, 1), lambda i, k: (i, 0)),        # labels (output rows)
            pl.BlockSpec((1, tp), lambda i, k: (0, k)),        # labels (K tile)
            pl.BlockSpec((tp, d_pad), lambda i, k: (k, 0)),    # features (K tile)
        ],
        out_specs=pl.BlockSpec((tp, d_pad), lambda i, k: (i, 0)),
        scratch_shapes=[pltpu.VMEM((tp, d_pad), jnp.float32)],
        compiler_params=pltpu.CompilerParams(
            dimension_semantics=("parallel", "arbitrary"),
            vmem_limit_bytes=vmem_limit),
    )(labels_c, labels_r, feat)

    # One-time O(N*D) transpose outside the hot loop so the loss matmul is a plain
    # (TM, D) @ (D, TN) with a lane-dense TN output (no per-iteration transpose).
    u_nt = u_n.T

    # ---- Kernel 2: row/column-tiled loss with a row_sum accumulator. ----
    per_row = pl.pallas_call(
        functools.partial(_loss_kernel, inv_t=1.0 / temperature, n_valid=n,
                          n_pad=n_pad, tn=tn, mxu_dtype=mxu_dtype),
        out_shape=jax.ShapeDtypeStruct((n_pad, 1), jnp.float32),
        grid=(n_pad // tm, n_pad // tn),
        in_specs=[
            pl.BlockSpec((tm, d_pad), lambda i, j: (i, 0)),    # feature rows
            pl.BlockSpec((d_pad, tn), lambda i, j: (0, j)),    # streamed u^T columns
            pl.BlockSpec((tm, d_pad), lambda i, j: (i, 0)),    # matching prototype rows
        ],
        out_specs=pl.BlockSpec((tm, 1), lambda i, j: (i, 0)),
        scratch_shapes=[pltpu.VMEM((tm, 1), jnp.float32)],
        compiler_params=pltpu.CompilerParams(
            dimension_semantics=("parallel", "arbitrary"),
            vmem_limit_bytes=vmem_limit),
    )(feat, u_nt, u_n)

    # Padded rows are excluded from the mean.
    return jnp.sum(per_row[:n, 0]) / n


def _reference(feat, labels, temperature=TEMPERATURE):
    """Pure-JAX reference of the PyTorch forward (keeps the /counts normalization)."""
    feat = feat.astype(jnp.float32)
    mask = (labels[:, None] == labels[None, :]).astype(jnp.float32)
    u = (mask @ feat) / jnp.sum(mask, axis=1, keepdims=True)
    fn = jnp.maximum(jnp.linalg.norm(feat, axis=1, keepdims=True), _EPS)
    un = jnp.maximum(jnp.linalg.norm(u, axis=1, keepdims=True), _EPS)
    sim = (feat / fn) @ (u / un).T
    e = jnp.exp(sim / temperature)
    diag = jnp.diagonal(e)
    row_sum = jnp.sum(e, axis=1)
    return jnp.sum(-jnp.log(diag / row_sum)) / feat.shape[0]


if __name__ == "__main__":
    key = jax.random.PRNGKey(0)
    k1, k2, k3, k4 = jax.random.split(key, 4)

    # Small shapes consistent with the module (batch=8, hidden=32).
    N, D = 8, 32
    fusion_feature = jax.random.normal(k1, (N, D), dtype=jnp.float32)
    labels = jax.random.randint(k2, (N,), 0, 3)

    ref = _reference(fusion_feature, labels)

    loss = protocon_loss(fusion_feature, labels)                 # default bf16 MXU path
    jax.block_until_ready(loss)
    assert jnp.allclose(loss, ref, rtol=2e-2, atol=2e-2), (loss, ref)

    loss_f32 = protocon_loss(fusion_feature, labels, mxu_dtype=jnp.float32)
    jax.block_until_ready(loss_f32)
    assert jnp.allclose(loss_f32, ref, rtol=1e-4, atol=1e-4), (loss_f32, ref)

    # Awkward N/D: exercises multi-tile grids, N/D padding and padded-column masking.
    N2, D2 = 300, 72
    feat2 = jax.random.normal(k3, (N2, D2), dtype=jnp.float32)
    labels2 = jax.random.randint(k4, (N2,), 0, 5)
    loss2 = protocon_loss(feat2, labels2)
    jax.block_until_ready(loss2)
    ref2 = _reference(feat2, labels2)
    assert jnp.allclose(loss2, ref2, rtol=2e-2, atol=2e-2), (loss2, ref2)

    print("KERNEL_OK")
</pallas_src>

<mosaic_0001>
module attributes {stable_mosaic.version = 11 : i64} {
  func.func @_proto_kernel(%arg0: i32, %arg1: i32, %arg2: memref<8x1xi32, #tpu.memory_space<vmem>>, %arg3: memref<1x8xi32, #tpu.memory_space<vmem>>, %arg4: memref<8x128xf32, #tpu.memory_space<vmem>>, %arg5: memref<8x128xbf16, #tpu.memory_space<vmem>>, %arg6: memref<8x128xf32, #tpu.memory_space<vmem>>) attributes {dimension_semantics = [#tpu.dimension_semantics<parallel>, #tpu.dimension_semantics<arbitrary>], iteration_bounds = array<i64: 1, 1>, scalar_prefetch = 0 : i64, scratch_operands = 1 : i64, tpu.core_type = #tpu.core_type<tc>, window_params = [{transform_indices = @transform_0, window_bounds = array<i64: 8, 1>}, {transform_indices = @transform_1, window_bounds = array<i64: 1, 8>}, {transform_indices = @transform_2, window_bounds = array<i64: 8, 128>}, {transform_indices = @transform_3, window_bounds = array<i64: 8, 128>}]} {
    %c0_i32 = arith.constant 0 : i32
    %0 = arith.cmpi eq, %arg1, %c0_i32 : i32
    %1 = arith.extui %0 : i1 to i32
    %c0_i32_0 = arith.constant 0 : i32
    %2 = arith.cmpi ne, %1, %c0_i32_0 : i32
    scf.if %2 {
      %cst_12 = arith.constant 0.000000e+00 : f32
      %20 = vector.broadcast %cst_12 : f32 to vector<8x128xf32>
      %c0_13 = arith.constant 0 : index
      %c0_14 = arith.constant 0 : index
      %21 = vector.load %arg6[%c0_13, %c0_14] : memref<8x128xf32, #tpu.memory_space<vmem>>, vector<8x128xf32>
      tpu.vector_store %arg6[%c0_13, %c0_14], %20 {strides = array<i32>} : memref<8x128xf32, #tpu.memory_space<vmem>>, vector<8x128xf32>,
    } else {
    }
    %c0 = arith.constant 0 : index
    %c0_1 = arith.constant 0 : index
    %3 = vector.load %arg2[%c0, %c0_1] : memref<8x1xi32, #tpu.memory_space<vmem>>, vector<8x1xi32>
    %c0_2 = arith.constant 0 : index
    %c0_3 = arith.constant 0 : index
    %4 = vector.load %arg3[%c0_2, %c0_3] : memref<1x8xi32, #tpu.memory_space<vmem>>, vector<1x8xi32>
    %5 = vector.broadcast %3 : vector<8x1xi32> to vector<8x8xi32>
    %6 = vector.broadcast %4 : vector<1x8xi32> to vector<8x8xi32>
    %7 = arith.cmpi eq, %5, %6 : vector<8x8xi32>
    %8 = arith.extui %7 : vector<8x8xi1> to vector<8x8xi32>
    %9 = arith.sitofp %8 : vector<8x8xi32> to vector<8x8xf32>
    %10 = arith.truncf %9 : vector<8x8xf32> to vector<8x8xbf16>
    %c0_4 = arith.constant 0 : index
    %c0_5 = arith.constant 0 : index
    %11 = vector.load %arg6[%c0_4, %c0_5] : memref<8x128xf32, #tpu.memory_space<vmem>>, vector<8x128xf32>
    %c0_6 = arith.constant 0 : index
    %c0_7 = arith.constant 0 : index
    %12 = vector.load %arg4[%c0_6, %c0_7] : memref<8x128xf32, #tpu.memory_space<vmem>>, vector<8x128xf32>
    %13 = arith.truncf %12 : vector<8x128xf32> to vector<8x128xbf16>
    %cst = arith.constant dense<0.000000e+00> : vector<8x128xf32>
    %14 = tpu.matmul %10, %13, %cst {dimension_numbers = #tpu.dot_dimension_numbers<[1], [0], [0], [1], [0, 0, 1, 1], [], []>} : vector<8x8xbf16>, vector<8x128xbf16>, vector<8x128xf32> -> vector<8x128xf32>
    %15 = arith.addf %11, %14 : vector<8x128xf32>
    %c0_8 = arith.constant 0 : index
    %c0_9 = arith.constant 0 : index
    %16 = vector.load %arg6[%c0_8, %c0_9] : memref<8x128xf32, #tpu.memory_space<vmem>>, vector<8x128xf32>
    tpu.vector_store %arg6[%c0_8, %c0_9], %15 {strides = array<i32>} : memref<8x128xf32, #tpu.memory_space<vmem>>, vector<8x128xf32>,
    %c0_i32_10 = arith.constant 0 : i32
    %17 = arith.cmpi eq, %arg1, %c0_i32_10 : i32
    %18 = arith.extui %17 : i1 to i32
    %c0_i32_11 = arith.constant 0 : i32
    %19 = arith.cmpi ne, %18, %c0_i32_11 : i32
    scf.if %19 {
      %c0_12 = arith.constant 0 : index
      %c0_13 = arith.constant 0 : index
      %20 = vector.load %arg6[%c0_12, %c0_13] : memref<8x128xf32, #tpu.memory_space<vmem>>, vector<8x128xf32>
      %21 = arith.mulf %20, %20 : vector<8x128xf32>
      %cst_14 = arith.constant dense<0.000000e+00> : vector<8xf32>
      %22 = vector.multi_reduction <add>, %21, %cst_14 [1] : vector<8x128xf32> to vector<8xf32>
      %23 = vector.shape_cast %22 : vector<8xf32> to vector<8x1xf32>
      %cst_15 = arith.constant 1.000000e-16 : f32
      %24 = vector.broadcast %cst_15 : f32 to vector<8x1xf32>
      %25 = arith.maximumf %23, %24 : vector<8x1xf32>
      %26 = math.rsqrt %25 : vector<8x1xf32>
      %27 = vector.broadcast %26 : vector<8x1xf32> to vector<8x128xf32>
      %28 = arith.mulf %20, %27 : vector<8x128xf32>
      %29 = arith.truncf %28 : vector<8x128xf32> to vector<8x128xbf16>
      %c0_16 = arith.constant 0 : index
      %c0_17 = arith.constant 0 : index
      %30 = vector.load %arg5[%c0_16, %c0_17] : memref<8x128xbf16, #tpu.memory_space<vmem>>, vector<8x128xbf16>
      tpu.vector_store %arg5[%c0_16, %c0_17], %29 {strides = array<i32>} : memref<8x128xbf16, #tpu.memory_space<vmem>>, vector<8x128xbf16>,
    } else {
    }
    return
  }
  func.func @transform_0(%arg0: i32, %arg1: i32) -> (i32, i32) {
    %c0_i32 = arith.constant 0 : i32
    %c0_i32_0 = arith.constant 0 : i32
    return %arg0, %c0_i32 : i32, i32
  }
  func.func @transform_1(%arg0: i32, %arg1: i32) -> (i32, i32) {
    %c0_i32 = arith.constant 0 : i32
    %c0_i32_0 = arith.constant 0 : i32
    return %c0_i32, %arg1 : i32, i32
  }
  func.func @transform_2(%arg0: i32, %arg1: i32) -> (i32, i32) {
    %c0_i32 = arith.constant 0 : i32
    %c0_i32_0 = arith.constant 0 : i32
    return %arg1, %c0_i32 : i32, i32
  }
  func.func @transform_3(%arg0: i32, %arg1: i32) -> (i32, i32) {
    %c0_i32 = arith.constant 0 : i32
    %c0_i32_0 = arith.constant 0 : i32
    return %arg0, %c0_i32 : i32, i32
  }
}

</mosaic_0001>

<bundles_post_ra>
// kernel: tpu_custom_call.1
= control target key start
LH: loop header
LB: loop body
LE: loop exit
PB: predicated region body
PF: predicated region fallthrough
CT: control target
= control target key end

     0   :  { %v153_v2 = vmov 0   ;;  %v154_v3 = vmov 0.0   ;;  %vm41_vm0 = vcmask 1043456   ;;  %s189_s0 = inlined_call_operand.vmem [shape: s32[8,1], index: 0, kind: input, shape index: {}]   ;;  %s190_s1 = inlined_call_operand.vmem [shape: s32[1,8], index: 1, kind: input, shape index: {}]   ;;  %s191_s2 = inlined_call_operand.vmem [shape: f32[8,128], index: 2, kind: input, shape index: {}]   ;;  %s192_s3 = inlined_call_operand.hbm [shape: bf16[8,128], index: 3, kind: output, shape index: {}]  }
   0x1   :  { %v21_v0 = vld [vmem:[%s189_s0] sm:$0xff]  ;;  %128 = vset.pattern.permute.xlu0 %v153_v2  ;;  %118 = vmatprep.subr.bf16.mxu0 %v154_v3 }
   0x2   :  { %v35_v1 = vld [vmem:[%s191_s2] sm:$0xff] }
   0x3   :  { %v36_v4 = vpack.c.bf16 %v35_v1, %v35_v1 }
   0x4   :  { %8 = vsyncpa [#allocation4], 0  ;;  %24 = vperm.xlu0 %128, %v21_v0   ;;  %vm155_vm1 = vmmov 0   ;;  %v113_v6 = vld [vmem:[%s190_s1] ss:$0 sm:$0xff]  ;;  %vm37_vm3 = vcmask 64512  }
   0x5   :  { %120 = vmatprep.mubr.msk.bf16.mxu0 %vm155_vm1, %v154_v3  ;;  %v43_v5 = vsel %vm41_vm0, %v36_v4, 0  ;;  %s156_s0 = smov [#allocation3]  }
   0x6   :  { %119 = vmatpush3.bf16.msra.mxu0 %v43_v5  ;;  %s105_s2 = sshll.u32 %s156_s0, 4  ;;  %s106_s2 = int_to_ptr.vmem [resolvable:$true] %s105_s2 }
   0x7   :  { %s131_s1 = scalar_lea.vmem %s106_s2, 64  ;;  %p136_p1 = scmp.lt.s32.totalorder %s106_s2, %s106_s2 }
   0x8   :  { %p132_p0 = scmp.ne.s32.totalorder %s106_s2, %s131_s1  ;;  %p137_p2 = scmp.lt.s32.totalorder %s131_s1, %s131_s1 }
   0xa   :  { %p138_p3 = por %p137_p2, %p136_p1 }
   0xc   :  { %p139_p4 = pnand %p138_p3, %p132_p0 }
  0x7f   :  { %v25_v7 = vpop.permute.xlu0 %24 }
  0x80   :  { %vm30_vm2 = vcmp.eq.s32.totalorder %v25_v7, %v113_v6 }
  0x81   :  { %v114_v8 = vsel %vm30_vm2, 1.0, %v154_v3 }
  0x82   :  { %v33_v9 = vpack.c.bf16 %v114_v8, %v114_v8 }
  0x84   :  { %121 = vmatmul.mubr.msk.bf16.vlgmr.msra.gmra.mxu0 %vm37_vm3, %v33_v9 }
 0x144   :  { %v79_v10 = vpop.f32.mrf.mxu0 }
 0x145   :  { %v91_v11 = vmul.f32 %v79_v10, %v79_v10 }
 0x146   :  { %v122_v12 = vpop.f32.mrf.mxu0 }
 0x147   :  { %92 = vadd.xlane.f32.xlu0 %v91_v11 }
 0x148   :  { %v82_v13 = vpop.f32.mrf.mxu0 }
 0x14a   :  { %v123_v14 = vpop.f32.mrf.mxu0 }
 0x1d0   :  { %v93_v15 = vpop.xlane.xlu0 %92 }
 0x1d1   :  { %v94_v16 = vmax.f32 %v93_v15, 1e-16 }
 0x1d3   :  { %129 = vrsqrt.f32 %v94_v16 }
 0x1e0   :  { %v130_v17 = vpop.eup %129 }
 0x1e1   :  { %v96_v18 = vmul.f32 %v130_v17, %v79_v10 }
 0x1e3   :  { %v97_v19 = vpack.c.bf16 %v96_v18, %v96_v18 }
 0x1e5   :  { %98 = vst [vmem:[#allocation3] sm:$0xf] %v97_v19 }
 0x1e6   :  { %142 = shalt.err (!%p139_p4)
}
 0x1e7   :  { %108 = dma.vmem_to_hbm [thread:$0]  %s106_s2, 64, %s192_s3, [#allocation4]  }
 0x1e8   :  { %151 = dma.done.wait [#allocation4], 64  }
 0x1e9   :  { %152 = vsyncadd [#allocation4], 4294967232 }
 0x1ea   :  { %112 = vsyncpa [#allocation4], 1 }

</bundles_post_ra>
